<compile_context>
chip_gen: v5e
topology: v5e:2x2
jax: 0.10.0
libtpu: 0.0.40
codegen_flags: <defaults>
</compile_context>

<pallas_src>
import numpy as np
import jax
import jax.numpy as jnp
from jax.experimental import pallas as pl
from jax.experimental.pallas import tpu as pltpu


def bilinear_matrix(in_size: int, out_size: int) -> np.ndarray:
    """Row-stochastic (out, in) matrix reproducing
    F.interpolate(mode='bilinear', align_corners=False) along one axis."""
    if in_size == out_size:
        return np.eye(out_size, dtype=np.float32)
    scale = in_size / out_size
    A = np.zeros((out_size, in_size), dtype=np.float32)
    for i in range(out_size):
        src = max((i + 0.5) * scale - 0.5, 0.0)   # PyTorch clamps negative src
        i0 = min(int(np.floor(src)), in_size - 1)
        i1 = min(i0 + 1, in_size - 1)
        frac = src - i0
        A[i, i0] += 1.0 - frac
        A[i, i1] += frac
    return A


def _make_fused_kernel(C1, C2, H1, W1, H2, W2):
    S2 = H2 * W2

    def kernel(x_ref, wm_ref, ah_ref, awt_ref, b_ref, o_ref, r_scr, flat_scr):
        # x_ref:    (1, C1*H1, W1) f32  one NCHW image, rows = (c1, h1) pairs
        # wm_ref:   (C2, C1)       f32  conv1x1 weight        (grid-constant)
        # ah_ref:   (H2, H1)       f32  height interp matrix  (grid-constant)
        # awt_ref:  (W1, W2)       f32  width interp matrix^T (grid-constant)
        # b_ref:    (C2, 1)        f32  bias                  (grid-constant)
        # o_ref:    (1, C2, H2*W2) f32  one NCHW output image, spatial flat
        # r_scr:    (C1, H2, W2)   f32  VMEM scratch (resized activations)
        # flat_scr: (C1, H2*W2)    f32  VMEM scratch (spatially flattened)
        x2 = x_ref[0]                                          # (C1*H1, W1)

        # Width pass: one big-M 2D MXU matmul, M = C1*H1, K = W1, N = W2.
        t = jnp.dot(x2, awt_ref[...], preferred_element_type=jnp.float32)

        # Height pass: batched over the C1 input channels.  Ah is broadcast in
        # vregs only (never materialized / DMA'd per-channel from HBM).
        # The split below keeps the minor dim and is layout-trivial (H1 % 8 == 0).
        t3 = t.reshape(C1, H1, W2)
        ah_b = jnp.broadcast_to(ah_ref[...], (C1, H2, H1))
        # TODO(synk): block this batched dot over channel chunks when C1 is
        # large enough that the in-vreg Ah broadcast (C1*H2*H1 f32) would spill.
        r = jax.lax.dot_general(
            ah_b, t3,
            dimension_numbers=(((2,), (1,)), ((0,), (0,))),
            preferred_element_type=jnp.float32)                # (C1, H2, W2)

        # Flatten (H2, W2) onto the lane axis by staging through VMEM with
        # explicit loads/stores (manual minor-dim relayout; avoids relying on
        # a value-level reshape that crosses the (8,128) tile layout).
        # Cost: one extra VMEM round trip of C1*H2*W2 floats.
        r_scr[...] = r
        for h2 in range(H2):                                   # static loop
            flat_scr[:, h2 * W2:(h2 + 1) * W2] = r_scr[:, h2, :]

        # 1x1 conv: (C2, C1) @ (C1, H2*W2) + bias; lane-dense output store.
        y = jnp.dot(wm_ref[...], flat_scr[...],
                    preferred_element_type=jnp.float32) + b_ref[...]
        o_ref[0] = y.astype(o_ref.dtype)

    return kernel


def _conv1x1_kernel(x_ref, wm_ref, b_ref, o_ref):
    # Identity-resize path: pure 1x1 conv on flattened spatial (lane-dense).
    y = jnp.dot(wm_ref[...], x_ref[0], preferred_element_type=jnp.float32)
    o_ref[0] = (y + b_ref[...]).astype(o_ref.dtype)


def conv1x1_stitching_forward(x, weight, bias, from_shape, to_shape):
    """x: (N, C1, H1, W1) NCHW; weight: (C2, C1) (or (C2, C1, 1, 1)); bias: (C2,).
    Returns (N, C2, H2, W2) NCHW, matching Conv1x1StitchingLayer.forward."""
    N, C1, H1, W1 = x.shape
    C2, H2, W2 = to_shape
    assert (C1, H1, W1) == tuple(from_shape)
    S2 = H2 * W2
    need_resize = (H1, W1) != (H2, W2)

    xf = x.astype(jnp.float32)
    wm = weight.astype(jnp.float32).reshape(C2, C1)
    b2 = bias.astype(jnp.float32).reshape(C2, 1)

    # One fused image per grid step -> N "parallel" steps.  At these toy sizes
    # the whole problem is a few tens of KiB, so a few fat steps beat many
    # tiny ones (per-step overhead ~0.35 us).
    # TODO(synk): add an output-spatial tiling grid axis (and more steps per
    # core) once a single image's working set approaches the VMEM budget below.
    scratch_shapes = []
    if need_resize:
        ah = jnp.asarray(bilinear_matrix(H1, H2), jnp.float32)       # (H2, H1)
        awt = jnp.asarray(bilinear_matrix(W1, W2).T, jnp.float32)    # (W1, W2)
        x_in = xf.reshape(N, C1 * H1, W1)     # contiguous NCHW view, no copy
        kernel = _make_fused_kernel(C1, C2, H1, W1, H2, W2)
        in_specs = [
            pl.BlockSpec((1, C1 * H1, W1), lambda n: (n, 0, 0)),
            pl.BlockSpec((C2, C1), lambda n: (0, 0)),    # grid-constant
            pl.BlockSpec((H2, H1), lambda n: (0, 0)),    # grid-constant
            pl.BlockSpec((W1, W2), lambda n: (0, 0)),    # grid-constant
            pl.BlockSpec((C2, 1), lambda n: (0, 0)),     # grid-constant
        ]
        operands = (x_in, wm, ah, awt, b2)
        scratch_shapes = [
            pltpu.VMEM((C1, H2, W2), jnp.float32),
            pltpu.VMEM((C1, S2), jnp.float32),
        ]
        work_words = (2 * C1 * H1 * W1 + C1 * H2 * W2 + C1 * S2
                      + 2 * C2 * S2 + C2 * C1 + H2 * H1 + W1 * W2 + C2)
    else:
        x_in = xf.reshape(N, C1, H1 * W1)     # contiguous NCHW view, no copy
        kernel = _conv1x1_kernel
        in_specs = [
            pl.BlockSpec((1, C1, H1 * W1), lambda n: (n, 0, 0)),
            pl.BlockSpec((C2, C1), lambda n: (0, 0)),    # grid-constant
            pl.BlockSpec((C2, 1), lambda n: (0, 0)),     # grid-constant
        ]
        operands = (x_in, wm, b2)
        work_words = 2 * C1 * H1 * W1 + 2 * C2 * S2 + C2 * C1 + C2

    # Explicit per-generation VMEM budget: keep the (double-buffered) working
    # set well under v7x's 64 MiB (v5e/v6e have 128 MiB).
    work_bytes = 4 * work_words
    assert work_bytes < 40 * (1 << 20), (
        "per-image working set too large for v7x VMEM; add spatial tiling")
    vmem_limit = int(min(48 * (1 << 20), max(8 * (1 << 20), 4 * work_bytes)))

    out_flat = pl.pallas_call(
        kernel,
        out_shape=jax.ShapeDtypeStruct((N, C2, S2), jnp.float32),
        grid_spec=pltpu.PrefetchScalarGridSpec(
            num_scalar_prefetch=0,
            grid=(N,),
            in_specs=in_specs,
            out_specs=pl.BlockSpec((1, C2, S2), lambda n: (n, 0, 0)),
            scratch_shapes=scratch_shapes,
        ),
        compiler_params=pltpu.CompilerParams(
            dimension_semantics=("parallel",),
            vmem_limit_bytes=vmem_limit),
    )(*operands)

    return out_flat.reshape(N, C2, H2, W2)


if __name__ == "__main__":
    # Small shapes consistent with the module: batch=2, from (4, 8, 8) -> to (8, 16, 16).
    N = 2
    from_shape = (4, 8, 8)
    to_shape = (8, 16, 16)
    C1, H1, W1 = from_shape
    C2, H2, W2 = to_shape

    key = jax.random.PRNGKey(0)
    kx, kw, kb = jax.random.split(key, 3)
    x = jax.random.normal(kx, (N, C1, H1, W1), dtype=jnp.float32)
    # nn.Conv2d(C1, C2, 1) weights: (C2, C1, 1, 1) squeezed to (C2, C1), bias (C2,).
    bound = 1.0 / np.sqrt(C1)
    weight = jax.random.uniform(kw, (C2, C1), jnp.float32, -bound, bound)
    bias = jax.random.uniform(kb, (C2,), jnp.float32, -bound, bound)

    out = conv1x1_stitching_forward(x, weight, bias, from_shape, to_shape)
    out = jax.block_until_ready(out)
    assert out.shape == (N, C2, H2, W2), out.shape

    # Host-side float64 reference (same bilinear matrices; resize then conv).
    x64 = np.asarray(x, np.float64)
    w64 = np.asarray(weight, np.float64)
    b64 = np.asarray(bias, np.float64)
    Ah = bilinear_matrix(H1, H2).astype(np.float64)
    Aw = bilinear_matrix(W1, W2).astype(np.float64)
    resized = np.einsum("nchw,Hh,Ww->ncHW", x64, Ah, Aw)
    ref = np.einsum("oc,ncHW->noHW", w64, resized) + b64[None, :, None, None]
    # All kernel math is f32 with f32 accumulation (no bf16 casts anywhere);
    # observed error is ~1e-6.  The bound is set conservatively to cover TPU
    # generations/compilers whose f32 MXU path uses reduced-precision passes.
    np.testing.assert_allclose(np.asarray(out, np.float64), ref,
                               atol=2e-2, rtol=2e-2)

    # Identity-resize path (spatial shapes equal -> pure 1x1 conv kernel).
    from_shape2 = (4, 16, 16)
    to_shape2 = (8, 16, 16)
    x2 = jax.random.normal(kx, (N,) + from_shape2, dtype=jnp.float32)
    out2 = conv1x1_stitching_forward(x2, weight, bias, from_shape2, to_shape2)
    out2 = jax.block_until_ready(out2)
    ref2 = (np.einsum("oc,nchw->nohw", w64, np.asarray(x2, np.float64))
            + b64[None, :, None, None])
    np.testing.assert_allclose(np.asarray(out2, np.float64), ref2,
                               atol=2e-2, rtol=2e-2)

    print("KERNEL_OK")
</pallas_src>

<mosaic_0001>
module attributes {stable_mosaic.version = 11 : i64} {
  func.func @kernel(%arg0: i32, %arg1: memref<1x32x8xf32, #tpu.memory_space<vmem>>, %arg2: memref<8x4xf32, #tpu.memory_space<vmem>>, %arg3: memref<16x8xf32, #tpu.memory_space<vmem>>, %arg4: memref<8x16xf32, #tpu.memory_space<vmem>>, %arg5: memref<8x1xf32, #tpu.memory_space<vmem>>, %arg6: memref<1x8x256xf32, #tpu.memory_space<vmem>>, %arg7: memref<4x16x16xf32, #tpu.memory_space<vmem>>, %arg8: memref<4x256xf32, #tpu.memory_space<vmem>>) attributes {dimension_semantics = [#tpu.dimension_semantics<parallel>], iteration_bounds = array<i64: 2>, scalar_prefetch = 0 : i64, scratch_operands = 2 : i64, tpu.core_type = #tpu.core_type<tc>, window_params = [{transform_indices = @transform_0, window_bounds = array<i64: 1, 32, 8>}, {pipeline_mode = #tpu.pipeline_mode<synchronous>, transform_indices = @transform_1, window_bounds = array<i64: 8, 4>}, {pipeline_mode = #tpu.pipeline_mode<synchronous>, transform_indices = @transform_2, window_bounds = array<i64: 16, 8>}, {pipeline_mode = #tpu.pipeline_mode<synchronous>, transform_indices = @transform_3, window_bounds = array<i64: 8, 16>}, {pipeline_mode = #tpu.pipeline_mode<synchronous>, transform_indices = @transform_4, window_bounds = array<i64: 8, 1>}, {transform_indices = @transform_5, window_bounds = array<i64: 1, 8, 256>}]} {
    %c0 = arith.constant 0 : index
    %c0_0 = arith.constant 0 : index
    %c0_1 = arith.constant 0 : index
    %0 = vector.load %arg1[%c0, %c0_0, %c0_1] : memref<1x32x8xf32, #tpu.memory_space<vmem>>, vector<1x32x8xf32>
    %1 = vector.shape_cast %0 : vector<1x32x8xf32> to vector<32x8xf32>
    %c0_2 = arith.constant 0 : index
    %c0_3 = arith.constant 0 : index
    %2 = vector.load %arg4[%c0_2, %c0_3] : memref<8x16xf32, #tpu.memory_space<vmem>>, vector<8x16xf32>
    %cst = arith.constant dense<0.000000e+00> : vector<32x16xf32>
    %3 = tpu.matmul %1, %2, %cst {dimension_numbers = #tpu.dot_dimension_numbers<[1], [0], [0], [1], [0, 0, 1, 1], [], []>} : vector<32x8xf32>, vector<8x16xf32>, vector<32x16xf32> -> vector<32x16xf32>
    %4 = vector.shape_cast %3 : vector<32x16xf32> to vector<4x8x16xf32>
    %c0_4 = arith.constant 0 : index
    %c0_5 = arith.constant 0 : index
    %5 = vector.load %arg3[%c0_4, %c0_5] : memref<16x8xf32, #tpu.memory_space<vmem>>, vector<16x8xf32>
    %6 = vector.shape_cast %5 : vector<16x8xf32> to vector<1x16x8xf32>
    %7 = vector.broadcast %6 : vector<1x16x8xf32> to vector<4x16x8xf32>
    %cst_6 = arith.constant dense<0.000000e+00> : vector<4x16x16xf32>
    %8 = tpu.matmul %7, %4, %cst_6 {dimension_numbers = #tpu.dot_dimension_numbers<[2], [1], [1], [2], [0, 0, 0, 1, 1, 2], [0], [0]>} : vector<4x16x8xf32>, vector<4x8x16xf32>, vector<4x16x16xf32> -> vector<4x16x16xf32>
    %c0_7 = arith.constant 0 : index
    %c0_8 = arith.constant 0 : index
    %c0_9 = arith.constant 0 : index
    %9 = vector.load %arg7[%c0_7, %c0_8, %c0_9] : memref<4x16x16xf32, #tpu.memory_space<vmem>>, vector<4x16x16xf32>
    tpu.vector_store %arg7[%c0_7, %c0_8, %c0_9], %8 {strides = array<i32>} : memref<4x16x16xf32, #tpu.memory_space<vmem>>, vector<4x16x16xf32>,
    %c0_10 = arith.constant 0 : index
    %c0_11 = arith.constant 0 : index
    %c0_12 = arith.constant 0 : index
    %10 = vector.load %arg7[%c0_10, %c0_11, %c0_12] : memref<4x16x16xf32, #tpu.memory_space<vmem>>, vector<4x1x16xf32>
    %11 = vector.shape_cast %10 : vector<4x1x16xf32> to vector<4x16xf32>
    %c0_13 = arith.constant 0 : index
    %c0_14 = arith.constant 0 : index
    %12 = vector.load %arg8[%c0_13, %c0_14] : memref<4x256xf32, #tpu.memory_space<vmem>>, vector<4x16xf32>
    tpu.vector_store %arg8[%c0_13, %c0_14], %11 {strides = array<i32>} : memref<4x256xf32, #tpu.memory_space<vmem>>, vector<4x16xf32>,
    %c0_15 = arith.constant 0 : index
    %c1 = arith.constant 1 : index
    %c0_16 = arith.constant 0 : index
    %13 = vector.load %arg7[%c0_15, %c1, %c0_16] : memref<4x16x16xf32, #tpu.memory_space<vmem>>, vector<4x1x16xf32>
    %14 = vector.shape_cast %13 : vector<4x1x16xf32> to vector<4x16xf32>
    %c0_17 = arith.constant 0 : index
    %c16 = arith.constant 16 : index
    %15 = vector.load %arg8[%c0_17, %c16] : memref<4x256xf32, #tpu.memory_space<vmem>>, vector<4x16xf32>
    tpu.vector_store %arg8[%c0_17, %c16], %14 {strides = array<i32>} : memref<4x256xf32, #tpu.memory_space<vmem>>, vector<4x16xf32>,
    %c0_18 = arith.constant 0 : index
    %c2 = arith.constant 2 : index
    %c0_19 = arith.constant 0 : index
    %16 = vector.load %arg7[%c0_18, %c2, %c0_19] : memref<4x16x16xf32, #tpu.memory_space<vmem>>, vector<4x1x16xf32>
    %17 = vector.shape_cast %16 : vector<4x1x16xf32> to vector<4x16xf32>
    %c0_20 = arith.constant 0 : index
    %c32 = arith.constant 32 : index
    %18 = vector.load %arg8[%c0_20, %c32] : memref<4x256xf32, #tpu.memory_space<vmem>>, vector<4x16xf32>
    tpu.vector_store %arg8[%c0_20, %c32], %17 {strides = array<i32>} : memref<4x256xf32, #tpu.memory_space<vmem>>, vector<4x16xf32>,
    %c0_21 = arith.constant 0 : index
    %c3 = arith.constant 3 : index
    %c0_22 = arith.constant 0 : index
    %19 = vector.load %arg7[%c0_21, %c3, %c0_22] : memref<4x16x16xf32, #tpu.memory_space<vmem>>, vector<4x1x16xf32>
    %20 = vector.shape_cast %19 : vector<4x1x16xf32> to vector<4x16xf32>
    %c0_23 = arith.constant 0 : index
    %c48 = arith.constant 48 : index
    %21 = vector.load %arg8[%c0_23, %c48] : memref<4x256xf32, #tpu.memory_space<vmem>>, vector<4x16xf32>
    tpu.vector_store %arg8[%c0_23, %c48], %20 {strides = array<i32>} : memref<4x256xf32, #tpu.memory_space<vmem>>, vector<4x16xf32>,
    %c0_24 = arith.constant 0 : index
    %c4 = arith.constant 4 : index
    %c0_25 = arith.constant 0 : index
    %22 = vector.load %arg7[%c0_24, %c4, %c0_25] : memref<4x16x16xf32, #tpu.memory_space<vmem>>, vector<4x1x16xf32>
    %23 = vector.shape_cast %22 : vector<4x1x16xf32> to vector<4x16xf32>
    %c0_26 = arith.constant 0 : index
    %c64 = arith.constant 64 : index
    %24 = vector.load %arg8[%c0_26, %c64] : memref<4x256xf32, #tpu.memory_space<vmem>>, vector<4x16xf32>
    tpu.vector_store %arg8[%c0_26, %c64], %23 {strides = array<i32>} : memref<4x256xf32, #tpu.memory_space<vmem>>, vector<4x16xf32>,
    %c0_27 = arith.constant 0 : index
    %c5 = arith.constant 5 : index
    %c0_28 = arith.constant 0 : index
    %25 = vector.load %arg7[%c0_27, %c5, %c0_28] : memref<4x16x16xf32, #tpu.memory_space<vmem>>, vector<4x1x16xf32>
    %26 = vector.shape_cast %25 : vector<4x1x16xf32> to vector<4x16xf32>
    %c0_29 = arith.constant 0 : index
    %c80 = arith.constant 80 : index
    %27 = vector.load %arg8[%c0_29, %c80] : memref<4x256xf32, #tpu.memory_space<vmem>>, vector<4x16xf32>
    tpu.vector_store %arg8[%c0_29, %c80], %26 {strides = array<i32>} : memref<4x256xf32, #tpu.memory_space<vmem>>, vector<4x16xf32>,
    %c0_30 = arith.constant 0 : index
    %c6 = arith.constant 6 : index
    %c0_31 = arith.constant 0 : index
    %28 = vector.load %arg7[%c0_30, %c6, %c0_31] : memref<4x16x16xf32, #tpu.memory_space<vmem>>, vector<4x1x16xf32>
    %29 = vector.shape_cast %28 : vector<4x1x16xf32> to vector<4x16xf32>
    %c0_32 = arith.constant 0 : index
    %c96 = arith.constant 96 : index
    %30 = vector.load %arg8[%c0_32, %c96] : memref<4x256xf32, #tpu.memory_space<vmem>>, vector<4x16xf32>
    tpu.vector_store %arg8[%c0_32, %c96], %29 {strides = array<i32>} : memref<4x256xf32, #tpu.memory_space<vmem>>, vector<4x16xf32>,
    %c0_33 = arith.constant 0 : index
    %c7 = arith.constant 7 : index
    %c0_34 = arith.constant 0 : index
    %31 = vector.load %arg7[%c0_33, %c7, %c0_34] : memref<4x16x16xf32, #tpu.memory_space<vmem>>, vector<4x1x16xf32>
    %32 = vector.shape_cast %31 : vector<4x1x16xf32> to vector<4x16xf32>
    %c0_35 = arith.constant 0 : index
    %c112 = arith.constant 112 : index
    %33 = vector.load %arg8[%c0_35, %c112] : memref<4x256xf32, #tpu.memory_space<vmem>>, vector<4x16xf32>
    tpu.vector_store %arg8[%c0_35, %c112], %32 {strides = array<i32>} : memref<4x256xf32, #tpu.memory_space<vmem>>, vector<4x16xf32>,
    %c0_36 = arith.constant 0 : index
    %c8 = arith.constant 8 : index
    %c0_37 = arith.constant 0 : index
    %34 = vector.load %arg7[%c0_36, %c8, %c0_37] : memref<4x16x16xf32, #tpu.memory_space<vmem>>, vector<4x1x16xf32>
    %35 = vector.shape_cast %34 : vector<4x1x16xf32> to vector<4x16xf32>
    %c0_38 = arith.constant 0 : index
    %c128 = arith.constant 128 : index
    %36 = vector.load %arg8[%c0_38, %c128] : memref<4x256xf32, #tpu.memory_space<vmem>>, vector<4x16xf32>
    tpu.vector_store %arg8[%c0_38, %c128], %35 {strides = array<i32>} : memref<4x256xf32, #tpu.memory_space<vmem>>, vector<4x16xf32>,
    %c0_39 = arith.constant 0 : index
    %c9 = arith.constant 9 : index
    %c0_40 = arith.constant 0 : index
    %37 = vector.load %arg7[%c0_39, %c9, %c0_40] : memref<4x16x16xf32, #tpu.memory_space<vmem>>, vector<4x1x16xf32>
    %38 = vector.shape_cast %37 : vector<4x1x16xf32> to vector<4x16xf32>
    %c0_41 = arith.constant 0 : index
    %c144 = arith.constant 144 : index
    %39 = vector.load %arg8[%c0_41, %c144] : memref<4x256xf32, #tpu.memory_space<vmem>>, vector<4x16xf32>
    tpu.vector_store %arg8[%c0_41, %c144], %38 {strides = array<i32>} : memref<4x256xf32, #tpu.memory_space<vmem>>, vector<4x16xf32>,
    %c0_42 = arith.constant 0 : index
    %c10 = arith.constant 10 : index
    %c0_43 = arith.constant 0 : index
    %40 = vector.load %arg7[%c0_42, %c10, %c0_43] : memref<4x16x16xf32, #tpu.memory_space<vmem>>, vector<4x1x16xf32>
    %41 = vector.shape_cast %40 : vector<4x1x16xf32> to vector<4x16xf32>
    %c0_44 = arith.constant 0 : index
    %c160 = arith.constant 160 : index
    %42 = vector.load %arg8[%c0_44, %c160] : memref<4x256xf32, #tpu.memory_space<vmem>>, vector<4x16xf32>
    tpu.vector_store %arg8[%c0_44, %c160], %41 {strides = array<i32>} : memref<4x256xf32, #tpu.memory_space<vmem>>, vector<4x16xf32>,
    %c0_45 = arith.constant 0 : index
    %c11 = arith.constant 11 : index
    %c0_46 = arith.constant 0 : index
    %43 = vector.load %arg7[%c0_45, %c11, %c0_46] : memref<4x16x16xf32, #tpu.memory_space<vmem>>, vector<4x1x16xf32>
    %44 = vector.shape_cast %43 : vector<4x1x16xf32> to vector<4x16xf32>
    %c0_47 = arith.constant 0 : index
    %c176 = arith.constant 176 : index
    %45 = vector.load %arg8[%c0_47, %c176] : memref<4x256xf32, #tpu.memory_space<vmem>>, vector<4x16xf32>
    tpu.vector_store %arg8[%c0_47, %c176], %44 {strides = array<i32>} : memref<4x256xf32, #tpu.memory_space<vmem>>, vector<4x16xf32>,
    %c0_48 = arith.constant 0 : index
    %c12 = arith.constant 12 : index
    %c0_49 = arith.constant 0 : index
    %46 = vector.load %arg7[%c0_48, %c12, %c0_49] : memref<4x16x16xf32, #tpu.memory_space<vmem>>, vector<4x1x16xf32>
    %47 = vector.shape_cast %46 : vector<4x1x16xf32> to vector<4x16xf32>
    %c0_50 = arith.constant 0 : index
    %c192 = arith.constant 192 : index
    %48 = vector.load %arg8[%c0_50, %c192] : memref<4x256xf32, #tpu.memory_space<vmem>>, vector<4x16xf32>
    tpu.vector_store %arg8[%c0_50, %c192], %47 {strides = array<i32>} : memref<4x256xf32, #tpu.memory_space<vmem>>, vector<4x16xf32>,
    %c0_51 = arith.constant 0 : index
    %c13 = arith.constant 13 : index
    %c0_52 = arith.constant 0 : index
    %49 = vector.load %arg7[%c0_51, %c13, %c0_52] : memref<4x16x16xf32, #tpu.memory_space<vmem>>, vector<4x1x16xf32>
    %50 = vector.shape_cast %49 : vector<4x1x16xf32> to vector<4x16xf32>
    %c0_53 = arith.constant 0 : index
    %c208 = arith.constant 208 : index
    %51 = vector.load %arg8[%c0_53, %c208] : memref<4x256xf32, #tpu.memory_space<vmem>>, vector<4x16xf32>
    tpu.vector_store %arg8[%c0_53, %c208], %50 {strides = array<i32>} : memref<4x256xf32, #tpu.memory_space<vmem>>, vector<4x16xf32>,
    %c0_54 = arith.constant 0 : index
    %c14 = arith.constant 14 : index
    %c0_55 = arith.constant 0 : index
    %52 = vector.load %arg7[%c0_54, %c14, %c0_55] : memref<4x16x16xf32, #tpu.memory_space<vmem>>, vector<4x1x16xf32>
    %53 = vector.shape_cast %52 : vector<4x1x16xf32> to vector<4x16xf32>
    %c0_56 = arith.constant 0 : index
    %c224 = arith.constant 224 : index
    %54 = vector.load %arg8[%c0_56, %c224] : memref<4x256xf32, #tpu.memory_space<vmem>>, vector<4x16xf32>
    tpu.vector_store %arg8[%c0_56, %c224], %53 {strides = array<i32>} : memref<4x256xf32, #tpu.memory_space<vmem>>, vector<4x16xf32>,
    %c0_57 = arith.constant 0 : index
    %c15 = arith.constant 15 : index
    %c0_58 = arith.constant 0 : index
    %55 = vector.load %arg7[%c0_57, %c15, %c0_58] : memref<4x16x16xf32, #tpu.memory_space<vmem>>, vector<4x1x16xf32>
    %56 = vector.shape_cast %55 : vector<4x1x16xf32> to vector<4x16xf32>
    %c0_59 = arith.constant 0 : index
    %c240 = arith.constant 240 : index
    %57 = vector.load %arg8[%c0_59, %c240] : memref<4x256xf32, #tpu.memory_space<vmem>>, vector<4x16xf32>
    tpu.vector_store %arg8[%c0_59, %c240], %56 {strides = array<i32>} : memref<4x256xf32, #tpu.memory_space<vmem>>, vector<4x16xf32>,
    %c0_60 = arith.constant 0 : index
    %c0_61 = arith.constant 0 : index
    %58 = vector.load %arg2[%c0_60, %c0_61] : memref<8x4xf32, #tpu.memory_space<vmem>>, vector<8x4xf32>
    %c0_62 = arith.constant 0 : index
    %c0_63 = arith.constant 0 : index
    %59 = vector.load %arg8[%c0_62, %c0_63] : memref<4x256xf32, #tpu.memory_space<vmem>>, vector<4x256xf32>
    %cst_64 = arith.constant dense<0.000000e+00> : vector<8x256xf32>
    %60 = tpu.matmul %58, %59, %cst_64 {dimension_numbers = #tpu.dot_dimension_numbers<[1], [0], [0], [1], [0, 0, 1, 1], [], []>} : vector<8x4xf32>, vector<4x256xf32>, vector<8x256xf32> -> vector<8x256xf32>
    %c0_65 = arith.constant 0 : index
    %c0_66 = arith.constant 0 : index
    %61 = vector.load %arg5[%c0_65, %c0_66] : memref<8x1xf32, #tpu.memory_space<vmem>>, vector<8x1xf32>
    %62 = vector.broadcast %61 : vector<8x1xf32> to vector<8x256xf32>
    %63 = arith.addf %60, %62 : vector<8x256xf32>
    %c0_67 = arith.constant 0 : index
    %c0_68 = arith.constant 0 : index
    %c0_69 = arith.constant 0 : index
    %64 = vector.load %arg6[%c0_67, %c0_68, %c0_69] : memref<1x8x256xf32, #tpu.memory_space<vmem>>, vector<1x8x256xf32>
    %65 = vector.shape_cast %64 : vector<1x8x256xf32> to vector<8x256xf32>
    %66 = vector.shape_cast %63 : vector<8x256xf32> to vector<1x8x256xf32>
    tpu.vector_store %arg6[%c0_67, %c0_68, %c0_69], %66 {strides = array<i32>} : memref<1x8x256xf32, #tpu.memory_space<vmem>>, vector<1x8x256xf32>,
    return
  }
  func.func @transform_0(%arg0: i32) -> (i32, i32, i32) {
    %c0_i32 = arith.constant 0 : i32
    %c0_i32_0 = arith.constant 0 : i32
    %c0_i32_1 = arith.constant 0 : i32
    return %arg0, %c0_i32, %c0_i32_0 : i32, i32, i32
  }
  func.func @transform_1(%arg0: i32) -> (i32, i32) {
    %c0_i32 = arith.constant 0 : i32
    %c0_i32_0 = arith.constant 0 : i32
    %c0_i32_1 = arith.constant 0 : i32
    return %c0_i32, %c0_i32_0 : i32, i32
  }
  func.func @transform_2(%arg0: i32) -> (i32, i32) {
    %c0_i32 = arith.constant 0 : i32
    %c0_i32_0 = arith.constant 0 : i32
    %c0_i32_1 = arith.constant 0 : i32
    return %c0_i32, %c0_i32_0 : i32, i32
  }
  func.func @transform_3(%arg0: i32) -> (i32, i32) {
    %c0_i32 = arith.constant 0 : i32
    %c0_i32_0 = arith.constant 0 : i32
    %c0_i32_1 = arith.constant 0 : i32
    return %c0_i32, %c0_i32_0 : i32, i32
  }
  func.func @transform_4(%arg0: i32) -> (i32, i32) {
    %c0_i32 = arith.constant 0 : i32
    %c0_i32_0 = arith.constant 0 : i32
    %c0_i32_1 = arith.constant 0 : i32
    return %c0_i32, %c0_i32_0 : i32, i32
  }
  func.func @transform_5(%arg0: i32) -> (i32, i32, i32) {
    %c0_i32 = arith.constant 0 : i32
    %c0_i32_0 = arith.constant 0 : i32
    %c0_i32_1 = arith.constant 0 : i32
    return %arg0, %c0_i32, %c0_i32_0 : i32, i32, i32
  }
}

</mosaic_0001>

<bundles_post_ra>
// kernel: tpu_custom_call.1
= control target key start
LH: loop header
LB: loop body
LE: loop exit
PB: predicated region body
PF: predicated region fallthrough
CT: control target
= control target key end

     0   :  { %10 = vsyncpa [#allocation5], 0  ;;  %s1325_s0 = inlined_call_operand.vmem [shape: f32[2,32,8], index: 0, kind: input, shape index: {}]   ;;  %s1326_s1 = inlined_call_operand.vmem [shape: f32[8,4], index: 1, kind: input, shape index: {}]   ;;  %s1327_s2 = inlined_call_operand.vmem [shape: f32[16,8], index: 2, kind: input, shape index: {}]   ;;  %s1328_s3 = inlined_call_operand.vmem [shape: f32[8,16], index: 3, kind: input, shape index: {}]   ;;  %s1329_s4 = inlined_call_operand.vmem [shape: f32[8,1], index: 4, kind: input, shape index: {}]   ;;  %s1330_s5 = inlined_call_operand.hbm [shape: f32[2,8,256], index: 5, kind: output, shape index: {}]  }
   0x1   :  { %12 = vsyncpa [#allocation5 + $0x1], 0  ;;  %s1045_s18 = smov 0   ;;  %s1047_s19 = smov 0  }
   0x2   :  { %s1049_s20 = smov 0   ;;  %s1051_s21 = smov 0  }
   0x3 LB: > { %s1066_s22 = sadd.s32 4294967295, %s1005_s21   ;;  %s864_s23 = sadd.s32 4294967294, %s1005_s21   ;;  %s1005_s21 = sphi %s1051_s21, %s1336_s21   ;;  %s1001_s20 = sphi %s1049_s20, %s1335_s20   ;;  %s997_s19 = sphi %s1047_s19, %s1334_s19   ;;  %s993_s18 = sphi %s1045_s18, %s1333_s18  }
   0x4   : > { %s1070_s24 = sadd.s32 1, %s1005_s21   ;;  %s135_s25 = sadd.s32 1, %s1001_s20 }
   0x5   : > { %s132_s26 = ssub.s32 %s1005_s21, %s1070_s24  ;;  %p145_p0 = scmp.ne.s32.totalorder %s1001_s20, %s997_s19 }
   0x6   : > { %p133_p1 = scmp.eq.s32.totalorder %s132_s26, 0  ;;  %p146_p2 = scmp.eq.s32.totalorder %s1066_s22, 1 }
   0x7   : > { %p151_p3 = scmp.ne.s32.totalorder %s997_s19, %s993_s18  ;;  %p152_p4 = scmp.eq.s32.totalorder %s864_s23, 1 }
   0x8   : > { %s1081_s27 = scalar_select %p133_p1, %s1001_s20, %s135_s25  }
   0x9   : > { %p1083_p5 = por %p146_p2, %p145_p0  ;;  %p1087_p6 = por %p152_p4, %p151_p3 }
   0xa   : > { %p867_p7 = scmp.ge.s32.totalorder %s1005_s21, 1  ;;  %p190_p8 = scmp.lt.s32.totalorder %s1005_s21, 3 }
   0xc   : > { %p191_p9 = pnand %p867_p7, %p190_p8 }
   0xd   : > { %p218_p10 = scmp.lt.s32.totalorder (!%p191_p9), %s1066_s22, 1  ;;  %s1007_s16 = smov (!%p191_p9), 48  }
   0xe   : > { %194 = sbr.rel (%p191_p9) target bundleno = 618 (0x26a), region = 40  ;;  %s1008_s17 = smov (!%p191_p9), 32  }
   0xf   : > { %s1009_s23 = smov (!%p191_p9), 16   ;;  %s1010_s25 = smov (!%p191_p9), 80  }
  0x10   : > { %s1011_s26 = smov (!%p191_p9), 96   ;;  %s1012_s30 = smov (!%p191_p9), 64  }
  0x11   : > { %s1013_s6 = smov (!%p191_p9), 112   ;;  %s893_s13 = sshll.u32 (!%p191_p9), %s1066_s22, 4 }
  0x13   : > { %v227_v0 = vld [vmem:[%s1328_s3] sm:$0xff]  ;;  %s219_s7 = scalar_select %p218_p10, %s1066_s22, 1  ;;  %vm228_vm0 = vcmask 64512   ;;  %v271_v7 = vld [vmem:[%s1327_s2 + $0x8] sm:$0xff]  ;;  %vm370_vm1 = vcmask 130048   ;;  %vm388_vm2 = vcmask 1041409  }
  0x14   : > { %256 = vmatpush.msra.mxu0 %v227_v0  ;;  %v270_v5 = vld [vmem:[%s1327_s2] sm:$0xff]  ;;  %vm390_vm3 = vcmask 1045509   ;;  %vm393_vm4 = vcmask 1042434   ;;  %vm395_vm5 = vcmask 1046534   ;;  %vm398_vm6 = vcmask 1043459  }
  0x15   : > { %s892_s8 = sshll.u32 %s219_s7, 5  ;;  %vm400_vm7 = vcmask 1047559   ;;  %vm403_vm8 = vcmask 125952   ;;  %vm425_vm9 = vcmask 257152   ;;  %vm447_vm10 = vcmask 388352  }
  0x16   : > { %s222_s11 = scalar_lea.vmem %s1325_s0, %s892_s8  ;;  %vm469_vm11 = vcmask 519552   ;;  %vm491_vm12 = vcmask 650752   ;;  %vm513_vm13 = vcmask 781952   ;;  %vm535_vm14 = vcmask 913152   ;;  %s963_s8 = scalar_lea.hbm %s1330_s5, 32 }
  0x17   : > { %v223_v1 = vld [vmem:[%s222_s11] sm:$0xff]  ;;  %v224_v2 = vld [vmem:[%s222_s11 + $0x8] sm:$0xff]  ;;  %v225_v3 = vld [vmem:[%s222_s11 + $0x10] sm:$0xff]  ;;  %vm557_vm15 = vcmask 1044352  }
  0x18   : > { %871 = vmatmul.msk.f32.vlgmr.msra.gmra.mxu0 %vm228_vm0, %v223_v1  ;;  %v226_v4 = vld [vmem:[%s222_s11 + $0x18] sm:$0xff]  ;;  %s215_s11 = sand.u32 1, %s997_s19  }
  0x19   : > { %s868_s12 = sshll.u32 %s215_s11, 4 }
  0x20   : > { %872 = vmatmul.msk.f32.gmra.mxu0 %vm228_vm0, %v224_v2 }
  0x28   : > { %873 = vmatmul.msk.f32.gmra.mxu0 %vm228_vm0, %v225_v3 }
  0x30   : > { %874 = vmatmul.msk.f32.gmra.mxu0 %vm228_vm0, %v226_v4 }
  0x95   : > { %v258_v6 = vpop.f32.mrf.mxu0 }
  0x96   : > { %293 = vmatpush.msra.mxu1 %v258_v6 }
  0x97   : > { %875 = vmatmul.msk.f32.vlgmr.msra.gmra.mxu1 %vm228_vm0, %v270_v5 }
  0x9d   : > { %v261_v8 = vpop.f32.mrf.mxu0 }
  0x9e   : > { %316 = vmatpush.msra.mxu2 %v261_v8 }
  0x9f   : > { %877 = vmatmul.msk.f32.vlgmr.msra.gmra.mxu2 %vm228_vm0, %v270_v5  ;;  %876 = vmatmul.msk.f32.gmra.mxu1 %vm228_vm0, %v271_v7 }
  0xa5   : > { %v264_v9 = vpop.f32.mrf.mxu0 }
  0xa6   : > { %339 = vmatpush.msra.mxu3 %v264_v9 }
  0xa7   : > { %878 = vmatmul.msk.f32.gmra.mxu2 %vm228_vm0, %v271_v7  ;;  %879 = vmatmul.msk.f32.vlgmr.msra.gmra.mxu3 %vm228_vm0, %v270_v5 }
  0xad   : > { %v267_v10 = vpop.f32.mrf.mxu0 }
  0xae   : > { %362 = vmatpush.msrb.mxu1 %v267_v10 }
  0xaf   : > { %880 = vmatmul.msk.f32.gmra.mxu3 %vm228_vm0, %v271_v7  ;;  %881 = vmatmul.msk.f32.vlgmr.msrb.gmra.mxu1 %vm228_vm0, %v270_v5 }
  0xb7   : > { %882 = vmatmul.msk.f32.gmra.mxu1 %vm228_vm0, %v271_v7  ;;  %vm741_vm0 = vcmask 1043456  }
 0x114   : > { %v295_v11 = vpop.f32.mrf.mxu1 }
 0x115   : > { %371 = vst.msk [vmem:[#allocation2] sm:$0xff] %vm370_vm1, %v295_v11 }
 0x11c   : > { %v298_v12 = vpop.f32.mrf.mxu1  ;;  %v449_v27 = vld [vmem:[#allocation2 + $0x3] sm:$0x1]  ;;  %v427_v28 = vld [vmem:[#allocation2 + $0x2] sm:$0x1]  ;;  %v405_v29 = vld [vmem:[#allocation2 + $0x1] sm:$0x1] }
 0x11d   : > { %372 = vst.msk [vmem:[#allocation2 + $0x8] sm:$0xff] %vm370_vm1, %v298_v12  ;;  %v493_v33 = vld [vmem:[#allocation2 + $0x5] sm:$0x1]  ;;  %v515_v36 = vld [vmem:[#allocation2 + $0x6] sm:$0x1] }
 0x11e   : > { %v471_v39 = vld [vmem:[#allocation2 + $0x4] sm:$0x1] }
 0x122   : > { %v318_v13 = vpop.f32.mrf.mxu2 }
 0x123   : > { %373 = vst.msk [vmem:[#allocation2 + $0x10] sm:$0xff] %vm370_vm1, %v318_v13 }
 0x124   : > { %v620_v40 = vld [vmem:[#allocation2 + $0xb] sm:$0x1] }
 0x12a   : > { %v321_v14 = vpop.f32.mrf.mxu2  ;;  %v341_v15 = vpop.f32.mrf.mxu3  ;;  %v450_v16 = vld [vmem:[#allocation2 + $0x13] sm:$0x1]  ;;  %v428_v17 = vld [vmem:[#allocation2 + $0x12] sm:$0x1]  ;;  %v406_v18 = vld [vmem:[#allocation2 + $0x11] sm:$0x1] }
 0x12b   : > { %374 = vst.msk [vmem:[#allocation2 + $0x18] sm:$0xff] %vm370_vm1, %v321_v14  ;;  %v494_v19 = vld [vmem:[#allocation2 + $0x15] sm:$0x1]  ;;  %v457_v21 = vrot.slane %v450_v16, 7  ;;  %v435_v22 = vrot.slane %v428_v17, 7  ;;  %v413_v23 = vrot.slane %v406_v18, 7 }
 0x12c   : > { %375 = vst.msk [vmem:[#allocation2 + $0x20] sm:$0xff] %vm370_vm1, %v341_v15  ;;  %v364_v20 = vpop.f32.mrf.mxu1  ;;  %v501_v24 = vrot.slane %v494_v19, 7  ;;  %v1125_v25 = vld [vmem:[#allocation2 + $0x16] sm:$0x1]  ;;  %v1127_v26 = vld [vmem:[#allocation2 + $0x14] sm:$0x1] }
 0x12d   : > { %377 = vst.msk [vmem:[#allocation2 + $0x30] sm:$0xff] %vm370_vm1, %v364_v20  ;;  %v458_v30 = vsel %vm388_vm2, %v457_v21, %v449_v27  ;;  %v436_v31 = vsel %vm388_vm2, %v435_v22, %v427_v28  ;;  %v414_v32 = vsel %vm388_vm2, %v413_v23, %v405_v29  ;;  %v523_v34 = vrot.slane %v1125_v25, 7 }
 0x12e   : > { %v502_v35 = vsel %vm388_vm2, %v501_v24, %v493_v33  ;;  %v479_v37 = vrot.slane %v1127_v26, 7  ;;  %v459_v44 = vsel %vm390_vm3, %v457_v21, %v458_v30  ;;  %v437_v46 = vsel %vm390_vm3, %v435_v22, %v436_v31  ;;  %v599_v31 = vld [vmem:[#allocation2 + $0xa] sm:$0x1] }
 0x12f   : > { %v415_v47 = vsel %vm390_vm3, %v413_v23, %v414_v32  ;;  %v503_v54 = vsel %vm390_vm3, %v501_v24, %v502_v35  ;;  %v524_v55 = vsel %vm388_vm2, %v523_v34, %v515_v36 }
 0x130   : > { %v480_v59 = vsel %vm388_vm2, %v479_v37, %v471_v39  ;;  %v525_v28 = vsel %vm390_vm3, %v523_v34, %v524_v55 }
 0x131   : > { %v481_v35 = vsel %vm390_vm3, %v479_v37, %v480_v59 }
 0x132   : > { %v344_v38 = vpop.f32.mrf.mxu3  ;;  %v1135_v41 = vld [vmem:[#allocation2 + $0x1b] sm:$0x1]  ;;  %v1137_v42 = vld [vmem:[#allocation2 + $0x1a] sm:$0x1] }
 0x133   : > { %376 = vst.msk [vmem:[#allocation2 + $0x28] sm:$0xff] %vm370_vm1, %v344_v38  ;;  %v451_v43 = vld [vmem:[#allocation2 + $0x23] sm:$0x1]  ;;  %v429_v45 = vld [vmem:[#allocation2 + $0x22] sm:$0x1]  ;;  %v628_v48 = vrot.slane %v1135_v41, 7 }
 0x134   : > { %v367_v49 = vpop.f32.mrf.mxu1  ;;  %v452_v50 = vld [vmem:[#allocation2 + $0x33] sm:$0x1]  ;;  %v460_v51 = vrot.slane %v451_v43, 6  ;;  %v430_v52 = vld [vmem:[#allocation2 + $0x32] sm:$0x1]  ;;  %v438_v53 = vrot.slane %v429_v45, 6 }
 0x135   : > { %378 = vst.msk [vmem:[#allocation2 + $0x38] sm:$0xff] %vm370_vm1, %v367_v49  ;;  %v463_v56 = vrot.slane %v452_v50, 5  ;;  %v441_v57 = vrot.slane %v430_v52, 5  ;;  %v407_v58 = vld [vmem:[#allocation2 + $0x21] sm:$0x1]  ;;  %v629_v60 = vsel %vm388_vm2, %v628_v48, %v620_v40  ;;  %v607_v2 = vrot.slane %v1137_v42, 7 }
 0x136   : > { %v461_v61 = vsel %vm393_vm4, %v460_v51, %v459_v44  ;;  %v439_v62 = vsel %vm393_vm4, %v438_v53, %v437_v46  ;;  %v408_v63 = vld [vmem:[#allocation2 + $0x31] sm:$0x1]  ;;  %v416_v0 = vrot.slane %v407_v58, 6  ;;  %v495_v1 = vld [vmem:[#allocation2 + $0x25] sm:$0x1]  ;;  %v630_v40 = vsel %vm390_vm3, %v628_v48, %v629_v60 }
 0x137   : > { %v462_v3 = vsel %vm395_vm5, %v460_v51, %v461_v61  ;;  %v440_v4 = vsel %vm395_vm5, %v438_v53, %v439_v62  ;;  %v419_v5 = vrot.slane %v408_v63, 5  ;;  %v496_v6 = vld [vmem:[#allocation2 + $0x35] sm:$0x1]  ;;  %v504_v7 = vrot.slane %v495_v1, 6  ;;  %v517_v8 = vld [vmem:[#allocation2 + $0x26] sm:$0x1] }
 0x138   : > { %v464_v9 = vsel %vm398_vm6, %v463_v56, %v462_v3  ;;  %v442_v10 = vsel %vm398_vm6, %v441_v57, %v440_v4  ;;  %v417_v11 = vsel %vm393_vm4, %v416_v0, %v415_v47  ;;  %v507_v12 = vrot.slane %v496_v6, 5  ;;  %v518_v13 = vld [vmem:[#allocation2 + $0x36] sm:$0x1]  ;;  %v473_v14 = vld [vmem:[#allocation2 + $0x24] sm:$0x1] }
 0x139   : > { %v465_v15 = vsel %vm400_vm7, %v463_v56, %v464_v9  ;;  %v443_v16 = vsel %vm400_vm7, %v441_v57, %v442_v10  ;;  %v418_v17 = vsel %vm395_vm5, %v416_v0, %v417_v11  ;;  %v505_v18 = vsel %vm393_vm4, %v504_v7, %v503_v54  ;;  %v474_v19 = vld [vmem:[#allocation2 + $0x34] sm:$0x1]  ;;  %v579_v41 = vld [vmem:[#allocation2 + $0x19] sm:$0x1]  ;;  %v1183_v42 = vld [vmem:[#allocation2 + $0x17] sm:$0x1] }
 0x13a   : > { %466 = vrot.lane.b32.xlu2 %v465_v15, %s1007_s16  ;;  %444 = vrot.lane.b32.xlu1 %v443_v16, %s1008_s17  ;;  %v420_v20 = vsel %vm398_vm6, %v419_v5, %v418_v17  ;;  %v506_v21 = vsel %vm395_vm5, %v504_v7, %v505_v18  ;;  %v526_v22 = vrot.slane %v517_v8, 6  ;;  %v529_v23 = vrot.slane %v518_v13, 5  ;;  %v622_v24 = vld [vmem:[#allocation2 + $0x2b] sm:$0x1]  ;;  %v601_v32 = vld [vmem:[#allocation2 + $0x2a] sm:$0x1] }
 0x13b   : > { %v421_v27 = vsel %vm400_vm7, %v419_v5, %v420_v20  ;;  %v482_v29 = vrot.slane %v473_v14, 6  ;;  %v485_v30 = vrot.slane %v474_v19, 5  ;;  %v631_v36 = vrot.slane %v622_v24, 6  ;;  %v580_v46 = vld [vmem:[#allocation2 + $0x29] sm:$0x1] }
 0x13c   : > { %422 = vrot.lane.b32.xlu0 %v421_v27, %s1009_s23  ;;  %v527_v33 = vsel %vm393_vm4, %v526_v22, %v525_v28  ;;  %v608_v38 = vsel %vm388_vm2, %v607_v2, %v599_v31  ;;  %v508_v25 = vsel %vm398_vm6, %v507_v12, %v506_v21  ;;  %v1187_v44 = vld [vmem:[#allocation2 + $0x3b] sm:$0x1]  ;;  %v610_v45 = vrot.slane %v601_v32, 6  ;;  %v1191_v49 = vld [vmem:[#allocation2 + $0x3a] sm:$0x1] }
 0x13d   : > { %v528_v34 = vsel %vm395_vm5, %v526_v22, %v527_v33  ;;  %v483_v39 = vsel %vm393_vm4, %v482_v29, %v481_v35  ;;  %v632_v37 = vsel %vm393_vm4, %v631_v36, %v630_v40  ;;  %v609_v50 = vsel %vm390_vm3, %v607_v2, %v608_v38  ;;  %v578_v48 = vld [vmem:[#allocation2 + $0x9] sm:$0x1]  ;;  %v684_v51 = vld [vmem:[#allocation2 + $0x1e] sm:$0x1]  ;;  %v1196_v54 = vld [vmem:[#allocation2 + $0x39] sm:$0x1] }
 0x13e   : > { %v530_v43 = vsel %vm398_vm6, %v529_v23, %v528_v34  ;;  %v484_v26 = vsel %vm395_vm5, %v482_v29, %v483_v39  ;;  %v509_v52 = vsel %vm400_vm7, %v507_v12, %v508_v25  ;;  %v611_v53 = vsel %vm393_vm4, %v610_v45, %v609_v50  ;;  %v642_v56 = vld [vmem:[#allocation2 + $0x1c] sm:$0x1]  ;;  %v1202_v62 = vld [vmem:[#allocation2 + $0x2e] sm:$0x1]  ;;  %v1204_v63 = vld [vmem:[#allocation2 + $0x2c] sm:$0x1] }
 0x13f   : > { %v486_v47 = vsel %vm398_vm6, %v485_v30, %v484_v26  ;;  %v586_v55 = vrot.slane %v579_v41, 7  ;;  %v545_v57 = vrot.slane %v1183_v42, 7  ;;  %v531_v58 = vsel %vm400_vm7, %v529_v23, %v530_v43  ;;  %v683_v3 = vld [vmem:[#allocation2 + $0xe] sm:$0x1]  ;;  %v663_v5 = vld [vmem:[#allocation2 + $0x1d] sm:$0x1] }
 0x140   : > { %v633_v59 = vsel %vm395_vm5, %v631_v36, %v632_v37  ;;  %v634_v60 = vrot.slane %v1187_v44, 5  ;;  %v589_v61 = vrot.slane %v580_v46, 6  ;;  %v487_v0 = vsel %vm400_vm7, %v485_v30, %v486_v47  ;;  %v664_v10 = vld [vmem:[#allocation2 + $0x2d] sm:$0x1]  ;;  %v380_v11 = vld [vmem:[#allocation2 + $0x10] sm:$0x1] }
 0x141   : > { %v613_v1 = vrot.slane %v1191_v49, 5  ;;  %v587_v2 = vsel %vm388_vm2, %v586_v55, %v578_v48  ;;  %v691_v4 = vrot.slane %v684_v51, 7  ;;  %v612_v6 = vsel %vm395_vm5, %v610_v45, %v611_v53  ;;  %v641_v15 = vld [vmem:[#allocation2 + $0xc] sm:$0x1]  ;;  %v537_v17 = vld [vmem:[#allocation2 + $0x7] sm:$0x1] }
 0x142   : > { %510 = vrot.lane.b32.xlu2 %v509_v52, %s1010_s25  ;;  %532 = vrot.lane.b32.xlu1 %v531_v58, %s1011_s26  ;;  %v588_v7 = vsel %vm390_vm3, %v586_v55, %v587_v2  ;;  %v592_v8 = vrot.slane %v1196_v54, 5  ;;  %v649_v9 = vrot.slane %v642_v56, 7  ;;  %v694_v14 = vrot.slane %v1202_v62, 6  ;;  %v662_v24 = vld [vmem:[#allocation2 + $0xd] sm:$0x1] }
 0x143   : > { %v590_v12 = vsel %vm393_vm4, %v589_v61, %v588_v7  ;;  %v692_v13 = vsel %vm388_vm2, %v691_v4, %v683_v3  ;;  %v652_v16 = vrot.slane %v1204_v63, 6  ;;  %v670_v20 = vrot.slane %v663_v5, 7  ;;  %v705_v28 = vld [vmem:[#allocation2 + $0x1f] sm:$0x1]  ;;  %v686_v30 = vld [vmem:[#allocation2 + $0x3e] sm:$0x1] }
 0x144   : > { %488 = vrot.lane.b32.xlu0 %v487_v0, %s1012_s30  ;;  %v591_v18 = vsel %vm395_vm5, %v589_v61, %v590_v12  ;;  %v650_v19 = vsel %vm388_vm2, %v649_v9, %v641_v15  ;;  %v546_v21 = vsel %vm388_vm2, %v545_v57, %v537_v17  ;;  %v635_v22 = vsel %vm398_vm6, %v634_v60, %v633_v59  ;;  %v644_v32 = vld [vmem:[#allocation2 + $0x3c] sm:$0x1]  ;;  %v665_v34 = vld [vmem:[#allocation2 + $0x3d] sm:$0x1]  ;;  %v706_v39 = vld [vmem:[#allocation2 + $0x2f] sm:$0x1] }
 0x145   : > { %v614_v23 = vsel %vm398_vm6, %v613_v1, %v612_v6  ;;  %v673_v27 = vrot.slane %v664_v10, 6  ;;  %v387_v29 = vrot.slane %v380_v11, 7  ;;  %v693_v31 = vsel %vm390_vm3, %v691_v4, %v692_v13  ;;  %v379_v41 = vld [vmem:[#allocation2] sm:$0x1]  ;;  %v382_v45 = vld [vmem:[#allocation2 + $0x30] sm:$0x1] }
 0x146   : > { %v651_v33 = vsel %vm390_vm3, %v649_v9, %v650_v19  ;;  %v671_v35 = vsel %vm388_vm2, %v670_v20, %v662_v24  ;;  %v593_v36 = vsel %vm398_vm6, %v592_v8, %v591_v18  ;;  %v695_v38 = vsel %vm393_vm4, %v694_v14, %v693_v31  ;;  %v381_v37 = vld [vmem:[#allocation2 + $0x20] sm:$0x1]  ;;  %v560_v48 = vld [vmem:[#allocation2 + $0x18] sm:$0x1]  ;;  %v561_v51 = vld [vmem:[#allocation2 + $0x28] sm:$0x1] }
 0x147   : > { %v653_v25 = vsel %vm393_vm4, %v652_v16, %v651_v33  ;;  %v547_v40 = vsel %vm390_vm3, %v545_v57, %v546_v21  ;;  %v636_v42 = vsel %vm400_vm7, %v634_v60, %v635_v22  ;;  %v615_v43 = vsel %vm400_vm7, %v613_v1, %v614_v23  ;;  %v704_v56 = vld [vmem:[#allocation2 + $0xf] sm:$0x1]  ;;  %v539_v57 = vld [vmem:[#allocation2 + $0x27] sm:$0x1]  ;;  %v562_v62 = vld [vmem:[#allocation2 + $0x38] sm:$0x1] }
 0x148   : > { %v672_v26 = vsel %vm390_vm3, %v670_v20, %v671_v35  ;;  %v712_v44 = vrot.slane %v705_v28, 7  ;;  %v697_v46 = vrot.slane %v686_v30, 5  ;;  %v655_v47 = vrot.slane %v644_v32, 5  ;;  %v559_v7 = vld [vmem:[#allocation2 + $0x8] sm:$0x1] }
 0x149   : > { %v674_v49 = vsel %vm393_vm4, %v673_v27, %v672_v26  ;;  %v389_v50 = vsel %vm388_vm2, %v387_v29, %v379_v41  ;;  %v594_v52 = vsel %vm400_vm7, %v592_v8, %v593_v36  ;;  %v696_v53 = vsel %vm395_vm5, %v694_v14, %v695_v38  ;;  %v707_v8 = vld [vmem:[#allocation2 + $0x3f] sm:$0x1]  ;;  %v540_v19 = vld [vmem:[#allocation2 + $0x37] sm:$0x1] }
 0x14a   : > { %637 = vrot.lane.b32.xlu2 %v636_v42, %s1007_s16  ;;  %616 = vrot.lane.b32.xlu1 %v615_v43, %s1008_s17  ;;  %v654_v54 = vsel %vm395_vm5, %v652_v16, %v653_v25  ;;  %v676_v55 = vrot.slane %v665_v34, 5  ;;  %v713_v58 = vsel %vm388_vm2, %v712_v44, %v704_v56  ;;  %v715_v59 = vrot.slane %v706_v39, 6  ;;  %s800_s16 = scalar_lea.hbm %s1330_s5, %s893_s13  ;;  %s217_s17 = scalar_lea.vmem [#allocation4], %s868_s12 }
 0x14b   : > { %v392_v60 = vrot.slane %v381_v37, 6  ;;  %v397_v61 = vrot.slane %v382_v45, 5  ;;  %v675_v63 = vsel %vm395_vm5, %v673_v27, %v674_v49  ;;  %v391_v0 = vsel %vm390_vm3, %v387_v29, %v389_v50  ;;  %v727_v37 = vld [vmem:[%s1329_s4] sm:$0xff] }
 0x14c   : > { %595 = vrot.lane.b32.xlu0 %v594_v52, %s1009_s23  ;;  %v567_v1 = vrot.slane %v560_v48, 7  ;;  %v570_v2 = vrot.slane %v561_v51, 6  ;;  %v698_v3 = vsel %vm398_vm6, %v697_v46, %v696_v53  ;;  %v656_v4 = vsel %vm398_vm6, %v655_v47, %v654_v54  ;;  %v725_v52 = vld [vmem:[%s1326_s1] sm:$0xff]  ;;  %s802_s23 = sshll.u32 %s217_s17, 4  ;;  %s803_s23 = int_to_ptr.vmem [resolvable:$true] %s802_s23 }
 0x14d   : > { %v548_v5 = vrot.slane %v539_v57, 6  ;;  %v394_v6 = vsel %vm393_vm4, %v392_v60, %v391_v0  ;;  %v714_v9 = vsel %vm390_vm3, %v712_v44, %v713_v58  ;;  %v573_v12 = vrot.slane %v562_v62, 5 }
 0x14e   : > { %v396_v10 = vsel %vm395_vm5, %v392_v60, %v394_v6  ;;  %v568_v11 = vsel %vm388_vm2, %v567_v1, %v559_v7  ;;  %v677_v13 = vsel %vm398_vm6, %v676_v55, %v675_v63  ;;  %v716_v14 = vsel %vm393_vm4, %v715_v59, %v714_v9 }
 0x14f   : > { %v399_v15 = vsel %vm398_vm6, %v397_v61, %v396_v10  ;;  %v569_v16 = vsel %vm390_vm3, %v567_v1, %v568_v11  ;;  %v699_v17 = vsel %vm400_vm7, %v697_v46, %v698_v3  ;;  %v657_v18 = vsel %vm400_vm7, %v655_v47, %v656_v4 }
 0x150   : > { %v401_v20 = vsel %vm400_vm7, %v397_v61, %v399_v15  ;;  %v571_v21 = vsel %vm393_vm4, %v570_v2, %v569_v16  ;;  %v718_v22 = vrot.slane %v707_v8, 5  ;;  %v549_v23 = vsel %vm393_vm4, %v548_v5, %v547_v40 }
 0x151   : > { %404 = vst.msk [vmem:[#allocation3] sm:$0xf] %vm403_vm8, %v401_v20  ;;  %v572_v24 = vsel %vm395_vm5, %v570_v2, %v571_v21  ;;  %v678_v27 = vsel %vm400_vm7, %v676_v55, %v677_v13  ;;  %v717_v28 = vsel %vm395_vm5, %v715_v59, %v716_v14  ;;  %v551_v30 = vrot.slane %v540_v19, 5 }
 0x152   : > { %700 = vrot.lane.b32.xlu2 %v699_v17, %s1011_s26  ;;  %658 = vrot.lane.b32.xlu1 %v657_v18, %s1012_s30  ;;  %v574_v29 = vsel %vm398_vm6, %v573_v12, %v572_v24  ;;  %v550_v32 = vsel %vm395_vm5, %v548_v5, %v549_v23  ;;  %v719_v33 = vsel %vm398_vm6, %v718_v22, %v717_v28  ;;  %v1014_v45 = vmov 0   ;;  %s789_s26 = scalar_lea.sflag [#allocation5], %s215_s11 }
 0x153   : > { %v575_v31 = vsel %vm400_vm7, %v573_v12, %v574_v29  ;;  %v552_v35 = vsel %vm398_vm6, %v551_v30, %v550_v32  ;;  %v720_v36 = vsel %vm400_vm7, %v718_v22, %v719_v33  ;;  %941 = vset.pattern.permute.xlu2 %v1014_v45  ;;  %942 = vset.pattern.permute.xlu0 %v1014_v45  ;;  %vm737_vm1 = vcmask 31744  }
 0x154   : > { %679 = vrot.lane.b32.xlu0 %v678_v27, %s1010_s25  ;;  %577 = vst.msk [vmem:[#allocation3 + $0x4] sm:$0xf] %vm403_vm8, %v575_v31  ;;  %v553_v38 = vsel %vm400_vm7, %v551_v30, %v552_v35  ;;  %s804_s25 = sshll.u32 %s800_s16, 4  ;;  %s805_s25 = int_to_ptr.hbm [resolvable:$true] %s804_s25 }
 0x155   : > { %s957_s30 = sshra.s32 %s805_s25, 4  ;;  %s958_s30 = int_to_ptr.hbm [resolvable:$true] %s957_s30 }
 0x156   : > { %s959_s22 = scalar_lea.hbm %s958_s30, 16  ;;  %p964_p0 = scmp.lt.s32.totalorder %s958_s30, %s1330_s5 }
 0x157   : > { %p960_p11 = scmp.ne.s32.totalorder %s958_s30, %s959_s22  ;;  %p965_p1 = scmp.lt.s32.totalorder %s963_s8, %s959_s22 }
 0x159   : > { %p961_p12 = pnand %p960_p11, %p1083_p5  ;;  %p966_p2 = por %p965_p1, %p964_p0 }
 0x15a   : > { %721 = vrot.lane.b32.xlu1 %v720_v36, %s1013_s6  ;;  %730 = vperm.xlu2 %941, %v727_v37  }
 0x15b   : > { %p962_p13 = pneg %p961_p12 }
 0x15c   : > { %554 = vrot.lane.b32.xlu0 %v553_v38, %s1013_s6 }
 0x15d   : > { %p967_p3 = pnand %p966_p2, %p962_p13 }
 0x194   : > { %v467_v25 = vpop.permute.xlu2 %466 }
 0x19c   : > { %v511_v40 = vpop.permute.xlu2 %510 }
 0x1a4   : > { %v638_v26 = vpop.permute.xlu2 %637 }
 0x1ac   : > { %v445_v34 = vpop.permute.xlu1 %444  ;;  %v701_v49 = vpop.permute.xlu2 %700 }
 0x1ae   : > { %v423_v39 = vpop.permute.xlu0 %422 }
 0x1af   : > { %426 = vst.msk [vmem:[#allocation3] sm:$0xf] %vm425_vm9, %v423_v39 }
 0x1b0   : > { %448 = vst.msk [vmem:[#allocation3] sm:$0xf] %vm447_vm10, %v445_v34 }
 0x1b1   : > { %470 = vst.msk [vmem:[#allocation3] sm:$0xf] %vm469_vm11, %v467_v25 }
 0x1b4   : > { %v533_v41 = vpop.permute.xlu1 %532  ;;  %v731_v55 = vpop.permute.xlu2 %730 }
 0x1b6   : > { %v489_v42 = vpop.permute.xlu0 %488 }
 0x1b7   : > { %492 = vst.msk [vmem:[#allocation3] sm:$0xf] %vm491_vm12, %v489_v42 }
 0x1b8   : > { %514 = vst.msk [vmem:[#allocation3] sm:$0xf] %vm513_vm13, %v511_v40 }
 0x1b9   : > { %536 = vst.msk [vmem:[#allocation3] sm:$0xf] %vm535_vm14, %v533_v41 }
 0x1bc   : > { %v617_v43 = vpop.permute.xlu1 %616 }
 0x1be   : > { %v596_v44 = vpop.permute.xlu0 %595 }
 0x1bf   : > { %598 = vst.msk [vmem:[#allocation3 + $0x4] sm:$0xf] %vm425_vm9, %v596_v44 }
 0x1c0   : > { %619 = vst.msk [vmem:[#allocation3 + $0x4] sm:$0xf] %vm447_vm10, %v617_v43 }
 0x1c1   : > { %640 = vst.msk [vmem:[#allocation3 + $0x4] sm:$0xf] %vm469_vm11, %v638_v26 }
 0x1c4   : > { %v659_v46 = vpop.permute.xlu1 %658 }
 0x1c5   : > { %661 = vst.msk [vmem:[#allocation3 + $0x4] sm:$0xf] %vm491_vm12, %v659_v46 }
 0x1c6   : > { %v680_v47 = vpop.permute.xlu0 %679 }
 0x1c7   : > { %682 = vst.msk [vmem:[#allocation3 + $0x4] sm:$0xf] %vm513_vm13, %v680_v47 }
 0x1c8   : > { %703 = vst.msk [vmem:[#allocation3 + $0x4] sm:$0xf] %vm535_vm14, %v701_v49 }
 0x1cc   : > { %v722_v50 = vpop.permute.xlu1 %721 }
 0x1cd   : > { %724 = vst.msk [vmem:[#allocation3 + $0x4] sm:$0xf] %vm557_vm15, %v722_v50 }
 0x1ce   : > { %v555_v48 = vpop.permute.xlu0 %554 }
 0x1cf   : > { %558 = vst.msk [vmem:[#allocation3] sm:$0xf] %vm557_vm15, %v555_v48 }
 0x1d6   : > { %v726_v51 = vld [vmem:[#allocation3] sm:$0xff] }
 0x1d7   : > { %734 = vst [vmem:[#allocation1] ss:$2 sm:$0xff] %v726_v51 }
 0x1de   : > { %v735_v53 = vld.sshfl [vmem:[#allocation1] sm:$0xff pattern:$0x75316420]  ;;  %v736_v54 = vld.sshfl [vmem:[#allocation1 + $0x8] sm:$0xff pattern:$0x75316420] }
 0x1df   : > { %883 = vmatpush.msk.msrb.mxu2 %vm741_vm0, %v735_v53  ;;  %885 = vmatpush.msk.msrb.mxu3 %vm741_vm0, %v736_v54 }
 0x1e0   : > { %884 = vmatmul.msk.f32.vlgmr.msrb.gmra.mxu2 %vm737_vm1, %v725_v52  ;;  %886 = vmatmul.msk.f32.vlgmr.msrb.gmra.mxu3 %vm737_vm1, %v725_v52 }
 0x263   : > { %v763_v56 = vpop.f32.mrf.mxu2  ;;  %v783_v57 = vpop.f32.mrf.mxu3 }
 0x264   : > { %v764_v58 = vadd.f32 %v763_v56, %v731_v55  ;;  %v784_v59 = vadd.f32 %v783_v57, %v731_v55 }
 0x266   : > { %786 = vst [vmem:[%s217_s17] sm:$0xff] %v764_v58 }
 0x267   : > { %787 = vst [vmem:[%s217_s17 + $0x8] sm:$0xff] %v784_v59 }
 0x268   : > { %970 = shalt.err (!%p967_p3)
}
 0x269   : > { %894 = dma.vmem_to_hbm [thread:$0]  (%p1083_p5), %s803_s23, 256, %s805_s25, %s789_s26  }
 0x26a PF: > { %p900_p4 = scmp.ge.s32.totalorder %s1005_s21, 2  ;;  %s816_s11 = sand.u32 1, %s993_s18  }
 0x26b   : > { %s817_s12 = scalar_lea.sflag [#allocation5], %s816_s11 }
 0x26c   : > { %p897_p7 = pnand %p900_p4, %p1087_p6 }
 0x26e   : > { %p898_p8 = pneg %p897_p7 }
 0x270   : > { %988 = dma.done.wait (%p898_p8), %s817_s12, 256  }
 0x271   : > { %990 = vsyncadd (%p898_p8), %s817_s12, 4294967040  ;;  %p15_p9 = scmp.ge.s32.totalorder %s1070_s24, 4   ;;  %s1333_s18 = smov %s997_s19 }
 0x272   : > { %s1334_s19 = smov %s1001_s20  ;;  %s1335_s20 = smov %s1081_s27 }
 0x273   : > { %s1336_s21 = smov %s1070_s24  ;;  %17 = sbr.rel (!%p15_p9) target bundleno = 3 (0x3), region = 75 }
 0x278   :  { %823 = vsyncpa [#allocation5], 1 }
 0x279   :  { %825 = vsyncpa [#allocation5 + $0x1], 1 }

</bundles_post_ra>
